<compile_context>
chip_gen: v7x
topology: tpu7x:2x2x1
jax: 0.10.0
libtpu: 0.0.40
codegen_flags: <defaults>
</compile_context>

<pallas_src>
import jax
import jax.numpy as jnp
from jax import lax
from jax.experimental import pallas as pl
from jax.experimental.pallas import tpu as pltpu


_MASK_PAD = 8      # mask-conv rows padded to a full sublane group -> conv slice is tile-aligned
_ACC_W = 512       # lane-dense accumulator / fold width (multiple of 128; review #5/#9)
_NEG = -1.0e30     # finite "-inf" sentinel: padded lanes contribute exp(~-1e30) == 0, never NaN


def _round_up(x, m):
    return ((x + m - 1) // m) * m


def _chip_kind():
    try:
        return jax.devices()[0].device_kind.lower()
    except Exception:
        return ""


def _chip_config():
    """(working-set VMEM budget, scoped vmem_limit_bytes, bf16-exp ok) per generation."""
    kind = _chip_kind()
    if "v7" in kind:                                   # 64 MiB physical VMEM: stay well clear
        return 20 << 20, 48 << 20, True
    if "v6" in kind:                                   # 128 MiB physical
        return 32 << 20, 80 << 20, True
    if any(v in kind for v in ("v2", "v3", "v4", "v5")):
        # v5e & older: no bf16 EUP; raise the 16 MiB scoped default via vmem_limit_bytes
        return 24 << 20, 64 << 20, False
    return 16 << 20, 40 << 20, False                   # unknown chip: conservative


def _bytes_per_hw_lane(Cin, Cout, nC):
    # double-buffered x + z slab + y slab / exp / attn temporaries, all f32 (review formula)
    return 4 * (2 * Cin + (_MASK_PAD + Cout) + 3 * nC * Cout)


def _choose_tiling(HW, cap, num_splits):
    """Return (hw_padded, t_hw): hw_padded % (num_splits * t_hw) == 0, both multiples of _ACC_W."""
    cap = max(_ACC_W, (cap // _ACC_W) * _ACC_W)
    hw_pad = _round_up(HW, _ACC_W)
    t_hw = min(cap, hw_pad)
    if hw_pad > cap:
        # prefer an exact divisor in (cap/2, cap] to avoid an extra padded tile
        cand = cap
        while cand * 2 > cap and cand >= _ACC_W:
            if hw_pad % cand == 0:
                t_hw = cand
                break
            cand -= _ACC_W
    hw_padded = _round_up(hw_pad, num_splits * t_hw)
    return hw_padded, t_hw


def _make_kernel(*, nC, n_col, t_hw, n_hw_split, hw_real, needs_mask, exp_dtype):
    def kernel(x_ref, wf_ref, bf_ref, m_out_ref, s_out_ref, m_acc, s_acc):
        split = pl.program_id(1)
        h = pl.program_id(2)
        n_h = pl.num_programs(2)

        # init lane-dense streaming-LSE accumulators for each (batch, split)
        @pl.when(h == 0)
        def _():
            m_acc[...] = jnp.full(m_acc.shape, _NEG, m_acc.dtype)
            s_acc[...] = jnp.zeros(s_acc.shape, s_acc.dtype)

        x = x_ref[0]                                                     # (Cin, tHW)

        # both 1x1 convs fused into a single MXU matmul
        z = (jnp.dot(wf_ref[...], x, preferred_element_type=jnp.float32)
             + bf_ref[...])                                              # (8+Cout, tHW)
        mask_logits = z[:nC, :]                                          # (nC, tHW)
        conv = z[_MASK_PAD:, :]                                          # (Cout, tHW) tile-aligned

        # per-pixel softmax over the classes (PyTorch Softmax(dim=1)); exact reciprocal
        # on purpose (review #10: don't add work to the saturated EUP).
        mmax = jnp.max(mask_logits, axis=0, keepdims=True)
        mexp = jnp.exp(mask_logits - mmax)
        attn = mexp * pl.reciprocal(jnp.sum(mexp, axis=0, keepdims=True), approx=False)

        y = conv[None, :, :] * attn[:, None, :]                          # (nC, Cout, tHW)

        if needs_mask:
            # padded lanes -> ~-1e30 before the max/sum update (review #8)
            pos = ((split * n_hw_split + h) * t_hw
                   + lax.broadcasted_iota(jnp.int32, (1, t_hw), 1))
            neg = jnp.where(pos < hw_real, jnp.float32(0.0), jnp.float32(_NEG))
            y = y + neg[None, :, :]

        # lane-dense streaming logsumexp: fold lane-aligned _ACC_W-wide columns.
        # Pure VPU/EUP work per tile; no per-tile cross-lane reduce or lane broadcast.
        cols = [y[:, :, j * _ACC_W:(j + 1) * _ACC_W] for j in range(n_col)]
        tile_max = cols[0]
        for c in cols[1:]:
            tile_max = jnp.maximum(tile_max, c)
        m_new = jnp.maximum(m_acc[...], tile_max)                        # (nC, Cout, _ACC_W)
        s_new = s_acc[...] * jnp.exp(m_acc[...] - m_new)                 # rescale stays f32
        for c in cols:
            # dominant exp: bf16 on v6e/v7x (packed EUP), f32 on v5e; sum accumulated in f32
            e = jnp.exp((c - m_new).astype(exp_dtype))
            s_new = s_new + e.astype(jnp.float32)
        m_acc[...] = m_new
        s_acc[...] = s_new

        # finalize this (batch, split): single cross-lane LSE merge, emit partial (m, s)
        @pl.when(h == n_h - 1)
        def _():
            m_lane = m_acc[...]
            m_red = jnp.max(m_lane, axis=-1, keepdims=True)              # (nC, Cout, 1)
            s_red = jnp.sum(s_acc[...] * jnp.exp(m_lane - m_red),
                            axis=-1, keepdims=True)
            m_out_ref[0, 0, :, :] = m_red[:, :, 0]
            s_out_ref[0, 0, :, :] = s_red[:, :, 0]

    return kernel


def outconv_forward(x_nchw, params, hw_tile=None, num_splits=None, exp_dtype=None):
    """x_nchw: (B, Cin, H, W) float32. Returns (B, nClasses) softmax probabilities."""
    B, Cin, H, W = x_nchw.shape
    HW = H * W
    Cout = params["wconv"].shape[0]
    nC = params["wmask"].shape[0]
    assert nC <= _MASK_PAD

    budget, vmem_limit, bf16_ok = _chip_config()
    if exp_dtype is None:
        exp_dtype = jnp.bfloat16 if bf16_ok else jnp.float32
    if num_splits is None:
        # give the second TensorCore work on 2-core chips (v7x / megacore) when B is tiny
        kind = _chip_kind()
        two_core = any(t in kind for t in ("v7", "v5p", "v4"))
        num_splits = 2 if (two_core and B < 2) else 1
    if hw_tile is None:
        # big tiles (review #1): ~budget-sized working set, capped at 32K lanes
        hw_tile = min(32768, budget // _bytes_per_hw_lane(Cin, Cout, nC))

    hw_padded, t_hw = _choose_tiling(HW, hw_tile, num_splits)
    n_hw_total = hw_padded // t_hw
    n_hw_split = n_hw_total // num_splits
    n_col = t_hw // _ACC_W
    needs_mask = hw_padded != HW

    # NCHW -> (B, Cin, HW): pure reshape (no transpose); pad the lane axis up to the tile multiple
    x = x_nchw.reshape(B, Cin, HW)
    if needs_mask:
        x = jnp.pad(x, ((0, 0), (0, 0), (0, hw_padded - HW)))

    # fuse mask conv + main conv into one weight / bias (mask rows padded to a sublane group)
    w_fused = jnp.concatenate(
        [params["wmask"], jnp.zeros((_MASK_PAD - nC, Cin), jnp.float32), params["wconv"]],
        axis=0)                                                          # (8+Cout, Cin)
    b_fused = jnp.concatenate(
        [params["bmask"], jnp.zeros((_MASK_PAD - nC,), jnp.float32), params["bconv"]],
        axis=0).reshape(_MASK_PAD + Cout, 1)                             # (8+Cout, 1)

    kernel = _make_kernel(nC=nC, n_col=n_col, t_hw=t_hw, n_hw_split=n_hw_split,
                          hw_real=HW, needs_mask=needs_mask, exp_dtype=exp_dtype)

    m_parts, s_parts = pl.pallas_call(
        kernel,
        out_shape=(jax.ShapeDtypeStruct((B, num_splits, nC, Cout), jnp.float32),
                   jax.ShapeDtypeStruct((B, num_splits, nC, Cout), jnp.float32)),
        grid=(B, num_splits, n_hw_split),
        in_specs=[
            # x: (review #11) add pipeline_mode=pl.Buffered(3) here only if xprof shows exposed DMA
            pl.BlockSpec((1, Cin, t_hw), lambda b, s, h: (b, 0, s * n_hw_split + h)),
            pl.BlockSpec((_MASK_PAD + Cout, Cin), lambda b, s, h: (0, 0)),
            pl.BlockSpec((_MASK_PAD + Cout, 1), lambda b, s, h: (0, 0)),
        ],
        out_specs=(
            pl.BlockSpec((1, 1, nC, Cout), lambda b, s, h: (b, s, 0, 0)),
            pl.BlockSpec((1, 1, nC, Cout), lambda b, s, h: (b, s, 0, 0)),
        ),
        scratch_shapes=[
            pltpu.VMEM((nC, Cout, _ACC_W), jnp.float32),   # running per-lane max
            pltpu.VMEM((nC, Cout, _ACC_W), jnp.float32),   # running per-lane sum
        ],
        compiler_params=pltpu.CompilerParams(
            dimension_semantics=("parallel", "parallel", "arbitrary"),
            vmem_limit_bytes=vmem_limit),
    )(x, w_fused, b_fused)

    # merge per-split partial logsumexps, per-class Linear(Cout, 1), final softmax (tiny, XLA)
    m_f = jnp.max(m_parts, axis=1)                                       # (B, nC, Cout)
    s_f = jnp.sum(s_parts * jnp.exp(m_parts - m_f[:, None]), axis=1)
    lse = m_f + jnp.log(s_f)                                             # (B, nC, Cout)
    logits = jnp.einsum("bko,ko->bk", lse, params["wfc"]) + params["bfc"][None, :]
    return jax.nn.softmax(logits, axis=1)


def reference_forward(x, p):
    """Pure-JAX reference mirroring the PyTorch forward (NCHW)."""
    mask_logits = jnp.einsum("bchw,kc->bkhw", x, p["wmask"]) + p["bmask"][None, :, None, None]
    attn = jax.nn.softmax(mask_logits, axis=1)
    conv = jnp.einsum("bchw,oc->bohw", x, p["wconv"]) + p["bconv"][None, :, None, None]
    outs = []
    for c in range(p["wfc"].shape[0]):
        y = conv * attn[:, c:c + 1, :, :]
        lse = jax.scipy.special.logsumexp(y, axis=(2, 3))                # (B, Cout)
        outs.append((lse @ p["wfc"][c] + p["bfc"][c])[:, None])          # (B, 1)
    return jax.nn.softmax(jnp.concatenate(outs, axis=1), axis=1)


def init_params(key, in_channels, out_channels, n_classes=3):
    ks = jax.random.split(key, 8)
    s = 0.2
    return {
        "wmask": s * jax.random.normal(ks[0], (n_classes, in_channels), jnp.float32),
        "bmask": s * jax.random.normal(ks[1], (n_classes,), jnp.float32),
        "wconv": s * jax.random.normal(ks[2], (out_channels, in_channels), jnp.float32),
        "bconv": s * jax.random.normal(ks[3], (out_channels,), jnp.float32),
        "wfc":   s * jax.random.normal(ks[4], (n_classes, out_channels), jnp.float32),
        "bfc":   s * jax.random.normal(ks[5], (n_classes,), jnp.float32),
    }
    # NOTE: dropout0/1/2 are declared in __init__ but never used in forward(); nothing to implement.


if __name__ == "__main__":
    key = jax.random.PRNGKey(0)
    kp, kx = jax.random.split(key)
    params = init_params(kp, 4, 8, n_classes=3)

    def check(shape, tol, **kw):
        kcase = jax.random.fold_in(kx, shape[0] * 100000 + shape[2] * 100 + shape[3])
        x = jax.random.normal(kcase, shape, jnp.float32)
        out = jax.block_until_ready(outconv_forward(x, params, **kw))
        ref = reference_forward(x, params)
        assert out.shape == (shape[0], 3)
        assert bool(jnp.all(jnp.isfinite(out)))
        assert jnp.allclose(out, ref, atol=tol, rtol=tol), (kw, out, ref)

    # exact-exp (f32) checks against the PyTorch-equivalent reference
    check((2, 4, 16, 16), 3e-5, exp_dtype=jnp.float32)                        # pad 256->512, single tile
    check((2, 4, 32, 36), 3e-5, exp_dtype=jnp.float32, hw_tile=512)           # 3 streamed tiles + padding
    check((1, 4, 16, 16), 3e-5, exp_dtype=jnp.float32, hw_tile=512,
          num_splits=2)                                                       # split merge (one split all-pad)
    # reduced-precision exp path (bf16 EUP on v6e/v7x; still runs on v5e) + multi-column fold
    check((2, 4, 32, 36), 2e-2, exp_dtype=jnp.bfloat16, hw_tile=1024)
    # fully auto configuration for whatever chip this runs on (tile, exp dtype, splits)
    check((2, 4, 16, 16), 2e-2)

    print("KERNEL_OK")
</pallas_src>

<mosaic_0001>
module attributes {stable_mosaic.version = 11 : i64} {
  func.func @kernel(%arg0: i32, %arg1: i32, %arg2: i32, %arg3: memref<1x4x512xf32, #tpu.memory_space<vmem>>, %arg4: memref<16x4xf32, #tpu.memory_space<vmem>>, %arg5: memref<16x1xf32, #tpu.memory_space<vmem>>, %arg6: memref<1x1x3x8xf32, #tpu.memory_space<vmem>>, %arg7: memref<1x1x3x8xf32, #tpu.memory_space<vmem>>, %arg8: memref<3x8x512xf32, #tpu.memory_space<vmem>>, %arg9: memref<3x8x512xf32, #tpu.memory_space<vmem>>) attributes {dimension_semantics = [#tpu.dimension_semantics<parallel>, #tpu.dimension_semantics<parallel>, #tpu.dimension_semantics<arbitrary>], iteration_bounds = array<i64: 2, 1, 1>, scalar_prefetch = 0 : i64, scratch_operands = 2 : i64, tpu.core_type = #tpu.core_type<tc>, window_params = [{transform_indices = @transform_0, window_bounds = array<i64: 1, 4, 512>}, {pipeline_mode = #tpu.pipeline_mode<synchronous>, transform_indices = @transform_1, window_bounds = array<i64: 16, 4>}, {pipeline_mode = #tpu.pipeline_mode<synchronous>, transform_indices = @transform_2, window_bounds = array<i64: 16, 1>}, {transform_indices = @transform_3, window_bounds = array<i64: 1, 1, 3, 8>}, {transform_indices = @transform_4, window_bounds = array<i64: 1, 1, 3, 8>}]} {
    %c0_i32 = arith.constant 0 : i32
    %0 = arith.cmpi eq, %arg2, %c0_i32 : i32
    %1 = arith.extui %0 : i1 to i32
    %c0_i32_0 = arith.constant 0 : i32
    %2 = arith.cmpi ne, %1, %c0_i32_0 : i32
    scf.if %2 {
      %cst_28 = arith.constant -1.000000e+30 : f32
      %56 = vector.broadcast %cst_28 : f32 to vector<3x8x512xf32>
      %c0_29 = arith.constant 0 : index
      %c0_30 = arith.constant 0 : index
      %c0_31 = arith.constant 0 : index
      %57 = vector.load %arg8[%c0_29, %c0_30, %c0_31] : memref<3x8x512xf32, #tpu.memory_space<vmem>>, vector<3x8x512xf32>
      tpu.vector_store %arg8[%c0_29, %c0_30, %c0_31], %56 {strides = array<i32>} : memref<3x8x512xf32, #tpu.memory_space<vmem>>, vector<3x8x512xf32>,
      %cst_32 = arith.constant 0.000000e+00 : f32
      %58 = vector.broadcast %cst_32 : f32 to vector<3x8x512xf32>
      %c0_33 = arith.constant 0 : index
      %c0_34 = arith.constant 0 : index
      %c0_35 = arith.constant 0 : index
      %59 = vector.load %arg9[%c0_33, %c0_34, %c0_35] : memref<3x8x512xf32, #tpu.memory_space<vmem>>, vector<3x8x512xf32>
      tpu.vector_store %arg9[%c0_33, %c0_34, %c0_35], %58 {strides = array<i32>} : memref<3x8x512xf32, #tpu.memory_space<vmem>>, vector<3x8x512xf32>,
    } else {
    }
    %c0 = arith.constant 0 : index
    %c0_1 = arith.constant 0 : index
    %c0_2 = arith.constant 0 : index
    %3 = vector.load %arg3[%c0, %c0_1, %c0_2] : memref<1x4x512xf32, #tpu.memory_space<vmem>>, vector<1x4x512xf32>
    %4 = vector.shape_cast %3 : vector<1x4x512xf32> to vector<4x512xf32>
    %c0_3 = arith.constant 0 : index
    %c0_4 = arith.constant 0 : index
    %5 = vector.load %arg4[%c0_3, %c0_4] : memref<16x4xf32, #tpu.memory_space<vmem>>, vector<16x4xf32>
    %cst = arith.constant dense<0.000000e+00> : vector<16x512xf32>
    %6 = tpu.matmul %5, %4, %cst {dimension_numbers = #tpu.dot_dimension_numbers<[1], [0], [0], [1], [0, 0, 1, 1], [], []>} : vector<16x4xf32>, vector<4x512xf32>, vector<16x512xf32> -> vector<16x512xf32>
    %c0_5 = arith.constant 0 : index
    %c0_6 = arith.constant 0 : index
    %7 = vector.load %arg5[%c0_5, %c0_6] : memref<16x1xf32, #tpu.memory_space<vmem>>, vector<16x1xf32>
    %8 = vector.broadcast %7 : vector<16x1xf32> to vector<16x512xf32>
    %9 = arith.addf %6, %8 : vector<16x512xf32>
    %10 = vector.extract_strided_slice %9 {offsets = [0, 0], sizes = [3, 512], strides = [1, 1]} : vector<16x512xf32> to vector<3x512xf32>
    %11 = vector.extract_strided_slice %9 {offsets = [8, 0], sizes = [8, 512], strides = [1, 1]} : vector<16x512xf32> to vector<8x512xf32>
    %cst_7 = arith.constant dense<0xFF800000> : vector<512xf32>
    %12 = vector.multi_reduction <maximumf>, %10, %cst_7 [0] : vector<3x512xf32> to vector<512xf32>
    %13 = vector.shape_cast %12 : vector<512xf32> to vector<1x512xf32>
    %14 = vector.broadcast %13 : vector<1x512xf32> to vector<3x512xf32>
    %15 = arith.subf %10, %14 : vector<3x512xf32>
    %16 = math.exp %15 : vector<3x512xf32>
    %cst_8 = arith.constant dense<0.000000e+00> : vector<512xf32>
    %17 = vector.multi_reduction <add>, %16, %cst_8 [0] : vector<3x512xf32> to vector<512xf32>
    %18 = vector.shape_cast %17 : vector<512xf32> to vector<1x512xf32>
    %19 = tpu.reciprocal %18 : vector<1x512xf32> -> vector<1x512xf32>
    %20 = vector.broadcast %19 : vector<1x512xf32> to vector<3x512xf32>
    %21 = arith.mulf %16, %20 : vector<3x512xf32>
    %22 = vector.shape_cast %11 : vector<8x512xf32> to vector<1x8x512xf32>
    %23 = vector.shape_cast %21 : vector<3x512xf32> to vector<3x1x512xf32>
    %24 = vector.broadcast %22 : vector<1x8x512xf32> to vector<3x8x512xf32>
    %25 = vector.broadcast %23 : vector<3x1x512xf32> to vector<3x8x512xf32>
    %26 = arith.mulf %24, %25 : vector<3x8x512xf32>
    %c1_i32 = arith.constant 1 : i32
    %27 = arith.muli %arg1, %c1_i32 : i32
    %28 = arith.addi %27, %arg2 : i32
    %c512_i32 = arith.constant 512 : i32
    %29 = arith.muli %28, %c512_i32 : i32
    %30 = tpu.iota {dimensions = array<i32: 1>} : vector<1x512xi32>
    %31 = vector.broadcast %29 : i32 to vector<1x512xi32>
    %32 = arith.addi %31, %30 : vector<1x512xi32>
    %c256_i32 = arith.constant 256 : i32
    %33 = vector.broadcast %c256_i32 : i32 to vector<1x512xi32>
    %34 = arith.cmpi slt, %32, %33 : vector<1x512xi32>
    %cst_9 = arith.constant 0.000000e+00 : f32
    %cst_10 = arith.constant -1.000000e+30 : f32
    %35 = vector.broadcast %cst_9 : f32 to vector<1x512xf32>
    %36 = vector.broadcast %cst_10 : f32 to vector<1x512xf32>
    %37 = arith.select %34, %35, %36 : vector<1x512xi1>, vector<1x512xf32>
    %38 = vector.shape_cast %37 : vector<1x512xf32> to vector<1x1x512xf32>
    %39 = vector.broadcast %38 : vector<1x1x512xf32> to vector<3x8x512xf32>
    %40 = arith.addf %26, %39 : vector<3x8x512xf32>
    %c0_11 = arith.constant 0 : index
    %c0_12 = arith.constant 0 : index
    %c0_13 = arith.constant 0 : index
    %41 = vector.load %arg8[%c0_11, %c0_12, %c0_13] : memref<3x8x512xf32, #tpu.memory_space<vmem>>, vector<3x8x512xf32>
    %42 = arith.maximumf %41, %40 : vector<3x8x512xf32>
    %c0_14 = arith.constant 0 : index
    %c0_15 = arith.constant 0 : index
    %c0_16 = arith.constant 0 : index
    %43 = vector.load %arg9[%c0_14, %c0_15, %c0_16] : memref<3x8x512xf32, #tpu.memory_space<vmem>>, vector<3x8x512xf32>
    %c0_17 = arith.constant 0 : index
    %c0_18 = arith.constant 0 : index
    %c0_19 = arith.constant 0 : index
    %44 = vector.load %arg8[%c0_17, %c0_18, %c0_19] : memref<3x8x512xf32, #tpu.memory_space<vmem>>, vector<3x8x512xf32>
    %45 = arith.subf %44, %42 : vector<3x8x512xf32>
    %46 = math.exp %45 : vector<3x8x512xf32>
    %47 = arith.mulf %43, %46 : vector<3x8x512xf32>
    %48 = arith.subf %40, %42 : vector<3x8x512xf32>
    %49 = math.exp %48 : vector<3x8x512xf32>
    %50 = arith.addf %47, %49 : vector<3x8x512xf32>
    %c0_20 = arith.constant 0 : index
    %c0_21 = arith.constant 0 : index
    %c0_22 = arith.constant 0 : index
    %51 = vector.load %arg8[%c0_20, %c0_21, %c0_22] : memref<3x8x512xf32, #tpu.memory_space<vmem>>, vector<3x8x512xf32>
    tpu.vector_store %arg8[%c0_20, %c0_21, %c0_22], %42 {strides = array<i32>} : memref<3x8x512xf32, #tpu.memory_space<vmem>>, vector<3x8x512xf32>,
    %c0_23 = arith.constant 0 : index
    %c0_24 = arith.constant 0 : index
    %c0_25 = arith.constant 0 : index
    %52 = vector.load %arg9[%c0_23, %c0_24, %c0_25] : memref<3x8x512xf32, #tpu.memory_space<vmem>>, vector<3x8x512xf32>
    tpu.vector_store %arg9[%c0_23, %c0_24, %c0_25], %50 {strides = array<i32>} : memref<3x8x512xf32, #tpu.memory_space<vmem>>, vector<3x8x512xf32>,
    %c0_i32_26 = arith.constant 0 : i32
    %53 = arith.cmpi eq, %arg2, %c0_i32_26 : i32
    %54 = arith.extui %53 : i1 to i32
    %c0_i32_27 = arith.constant 0 : i32
    %55 = arith.cmpi ne, %54, %c0_i32_27 : i32
    scf.if %55 {
      %c0_28 = arith.constant 0 : index
      %c0_29 = arith.constant 0 : index
      %c0_30 = arith.constant 0 : index
      %56 = vector.load %arg8[%c0_28, %c0_29, %c0_30] : memref<3x8x512xf32, #tpu.memory_space<vmem>>, vector<3x8x512xf32>
      %cst_31 = arith.constant dense<0xFF800000> : vector<3x8xf32>
      %57 = vector.multi_reduction <maximumf>, %56, %cst_31 [2] : vector<3x8x512xf32> to vector<3x8xf32>
      %58 = vector.shape_cast %57 : vector<3x8xf32> to vector<3x8x1xf32>
      %c0_32 = arith.constant 0 : index
      %c0_33 = arith.constant 0 : index
      %c0_34 = arith.constant 0 : index
      %59 = vector.load %arg9[%c0_32, %c0_33, %c0_34] : memref<3x8x512xf32, #tpu.memory_space<vmem>>, vector<3x8x512xf32>
      %60 = vector.broadcast %58 : vector<3x8x1xf32> to vector<3x8x512xf32>
      %61 = arith.subf %56, %60 : vector<3x8x512xf32>
      %62 = math.exp %61 : vector<3x8x512xf32>
      %63 = arith.mulf %59, %62 : vector<3x8x512xf32>
      %cst_35 = arith.constant dense<0.000000e+00> : vector<3x8xf32>
      %64 = vector.multi_reduction <add>, %63, %cst_35 [2] : vector<3x8x512xf32> to vector<3x8xf32>
      %65 = vector.shape_cast %64 : vector<3x8xf32> to vector<3x8x1xf32>
      %66 = vector.shape_cast %58 : vector<3x8x1xf32> to vector<3x8xf32>
      %c0_36 = arith.constant 0 : index
      %c0_37 = arith.constant 0 : index
      %c0_38 = arith.constant 0 : index
      %c0_39 = arith.constant 0 : index
      %67 = vector.load %arg6[%c0_36, %c0_37, %c0_38, %c0_39] : memref<1x1x3x8xf32, #tpu.memory_space<vmem>>, vector<1x1x3x8xf32>
      %68 = vector.shape_cast %67 : vector<1x1x3x8xf32> to vector<3x8xf32>
      %69 = vector.shape_cast %66 : vector<3x8xf32> to vector<1x1x3x8xf32>
      tpu.vector_store %arg6[%c0_36, %c0_37, %c0_38, %c0_39], %69 {strides = array<i32>} : memref<1x1x3x8xf32, #tpu.memory_space<vmem>>, vector<1x1x3x8xf32>,
      %70 = vector.shape_cast %65 : vector<3x8x1xf32> to vector<3x8xf32>
      %c0_40 = arith.constant 0 : index
      %c0_41 = arith.constant 0 : index
      %c0_42 = arith.constant 0 : index
      %c0_43 = arith.constant 0 : index
      %71 = vector.load %arg7[%c0_40, %c0_41, %c0_42, %c0_43] : memref<1x1x3x8xf32, #tpu.memory_space<vmem>>, vector<1x1x3x8xf32>
      %72 = vector.shape_cast %71 : vector<1x1x3x8xf32> to vector<3x8xf32>
      %73 = vector.shape_cast %70 : vector<3x8xf32> to vector<1x1x3x8xf32>
      tpu.vector_store %arg7[%c0_40, %c0_41, %c0_42, %c0_43], %73 {strides = array<i32>} : memref<1x1x3x8xf32, #tpu.memory_space<vmem>>, vector<1x1x3x8xf32>,
    } else {
    }
    return
  }
  func.func @transform_0(%arg0: i32, %arg1: i32, %arg2: i32) -> (i32, i32, i32) {
    %c1_i32 = arith.constant 1 : i32
    %0 = arith.muli %arg1, %c1_i32 : i32
    %1 = arith.addi %0, %arg2 : i32
    %c0_i32 = arith.constant 0 : i32
    %c0_i32_0 = arith.constant 0 : i32
    return %arg0, %c0_i32, %1 : i32, i32, i32
  }
  func.func @transform_1(%arg0: i32, %arg1: i32, %arg2: i32) -> (i32, i32) {
    %c0_i32 = arith.constant 0 : i32
    %c0_i32_0 = arith.constant 0 : i32
    %c0_i32_1 = arith.constant 0 : i32
    return %c0_i32, %c0_i32_0 : i32, i32
  }
  func.func @transform_2(%arg0: i32, %arg1: i32, %arg2: i32) -> (i32, i32) {
    %c0_i32 = arith.constant 0 : i32
    %c0_i32_0 = arith.constant 0 : i32
    %c0_i32_1 = arith.constant 0 : i32
    return %c0_i32, %c0_i32_0 : i32, i32
  }
  func.func @transform_3(%arg0: i32, %arg1: i32, %arg2: i32) -> (i32, i32, i32, i32) {
    %c0_i32 = arith.constant 0 : i32
    %c0_i32_0 = arith.constant 0 : i32
    %c0_i32_1 = arith.constant 0 : i32
    return %arg0, %arg1, %c0_i32, %c0_i32_0 : i32, i32, i32, i32
  }
  func.func @transform_4(%arg0: i32, %arg1: i32, %arg2: i32) -> (i32, i32, i32, i32) {
    %c0_i32 = arith.constant 0 : i32
    %c0_i32_0 = arith.constant 0 : i32
    %c0_i32_1 = arith.constant 0 : i32
    return %arg0, %arg1, %c0_i32, %c0_i32_0 : i32, i32, i32, i32
  }
}

</mosaic_0001>

<bundles_post_ra>
// kernel: tpu_custom_call.1
= control target key start
LH: loop header
LB: loop body
LE: loop exit
PB: predicated region body
PF: predicated region fallthrough
CT: control target
= control target key end

     0   :  { %s1314_s15 = smov 0   ;;  %s1316_s16 = smov 0   ;;  %s1531_s0 = inlined_call_operand.vmem [shape: f32[2,4,512], index: 0, kind: input, shape index: {}]   ;;  %s1532_s1 = inlined_call_operand.vmem [shape: f32[16,4], index: 1, kind: input, shape index: {}]   ;;  %s1533_s2 = inlined_call_operand.vmem [shape: f32[16,1], index: 2, kind: input, shape index: {}]   ;;  %s1534_s3 = inlined_call_operand.vmem [shape: f32[2,1,3,8], index: 3, kind: output, shape index: {0}]   ;;  %s1535_s4 = inlined_call_operand.vmem [shape: f32[2,1,3,8], index: 4, kind: output, shape index: {1}]  }
   0x1   :  { %s1318_s17 = smov 0  }
   0x2 LB: > { %s34_s18 = sadd.s32 1, %s1280_s16  ;;  %p1128_p0 = scmp.ge.s32.totalorder %s1284_s17, 1  ;;  %s1284_s17 = sphi %s1318_s17, %s15_s17   ;;  %s1280_s16 = sphi %s1316_s16, %s1537_s16   ;;  %s1276_s15 = sphi %s1314_s15, %s1536_s15  }
   0x3   : > { %p36_p1 = scmp.ge.s32.totalorder %s34_s18, 2  ;;  %p199_p2 = scmp.lt.s32.totalorder %s1284_s17, 3 }
   0x5   : > { %s1539_s18 = smov (%p36_p1, %s34_s18), 0  ;;  %p200_p3 = pnand %p1128_p0, %p199_p2 }
   0x6   : > { %p241_p4 = scmp.lt.s32.totalorder (!%p200_p3), %s1276_s15, 1  ;;  %v1286_v0 = vmov (!%p200_p3), 0.0   ;;  %v297_v1 = vld [vmem:[%s1533_s2] sm:$0xff] (!%p200_p3)  ;;  %v1287_v2 = vmov (!%p200_p3), 0   ;;  %v298_v3 = vld [vmem:[%s1533_s2 + $0x8] sm:$0xff] (!%p200_p3)  ;;  %vm320_vm0 = vcmask (!%p200_p3), 1043456   ;;  %v569_v10 = vlaneseq (!%p200_p3) }
   0x7   : > { %203 = sbr.rel (%p200_p3) target bundleno = 641 (0x281), region = 32  ;;  %393 = vmatprep.mubr.f32.mxu0 (!%p200_p3), %v1286_v0  ;;  %470 = vmatprep.mubr.f32.mxu1 (!%p200_p3), %v1286_v0  ;;  %v295_v8 = vld [vmem:[%s1532_s1] sm:$0xff] (!%p200_p3)  ;;  %vm313_vm1 = vcmask (!%p200_p3), 31744   ;;  %v296_v9 = vld [vmem:[%s1532_s1 + $0x8] sm:$0xff] (!%p200_p3)  ;;  %vm483_vm2 = vcmask (!%p200_p3), 1042432   ;;  %vm977_vm3 = vcmask (!%p200_p3), 1041409  }
   0x8   : > { %1171 = vset.pattern.permute.xlu0 (!%p200_p3), %v1287_v2  ;;  %v1350_v11 = vshrl.u32 (!%p200_p3), %v569_v10, 7  ;;  %v672_v12 = vand.u32 (!%p200_p3), 127, %v569_v10  ;;  %vm979_vm4 = vcmask (!%p200_p3), 1042434   ;;  %vm982_vm5 = vcmask (!%p200_p3), 59392  }
   0x9   : > { %301 = vperm.xlu0 (!%p200_p3), %1171, %v297_v1  }
   0xa   : > { %v1353_v13 = vsub.s32 (!%p200_p3), %v672_v12, %v1350_v11 }
   0xd   : > { %306 = vperm.xlu0 (!%p200_p3), %1171, %v298_v3  }
   0xe   : > { %s1541_s15 = smov (!%p241_p4, %s1276_s15), 1 }
   0xf   : > { %s1143_s21 = sshll.u32 %s1541_s15, 4  ;;  %s1131_s5 = sshll.u32 %s1541_s15, 2 }
  0x10   : > { %s248_s26 = scalar_lea.vmem %s1531_s0, %s1143_s21  ;;  %s257_s8 = scalar_lea.vmem %s1534_s3, %s1131_s5 }
  0x11   : > { %v293_v4 = vld [vmem:[%s248_s26] sm:$0xff]  ;;  %v294_v5 = vld [vmem:[%s248_s26 + $0x8] sm:$0xff]  ;;  %s264_s11 = scalar_lea.vmem %s1535_s4, %s1131_s5 }
  0x12   : > { %v311_v6 = vcombine.high %v293_v4, %v293_v4  ;;  %v312_v7 = vcombine.high %v294_v5, %v294_v5 }
  0x14   : > { %1133 = vmatprep.subr.msk.mxu0 %vm320_vm0, %v311_v6  ;;  %1137 = vmatprep.subr.msk.mxu1 %vm320_vm0, %v312_v7 }
  0x15   : > { %1134 = vmatpush1.msk.msra.mxu0 %vm320_vm0, %v293_v4  ;;  %1138 = vmatpush1.msk.msra.mxu1 %vm320_vm0, %v294_v5 }
  0x16   : > { %1135 = vmatmul.mubr.msk.f32.vlgmr.msra.gmra.mrb[0].mxu0 %vm313_vm1, %v295_v8  ;;  %1139 = vmatmul.mubr.msk.f32.vlgmr.msra.gmra.mrb[0].mxu1 %vm313_vm1, %v295_v8 }
  0x17   : > { %399 = vmatprep.mubr.f32.mxu0 %v1286_v0  ;;  %476 = vmatprep.mubr.f32.mxu1 %v1286_v0 }
  0x1a   : > { %1136 = vmatmul.mubr.msk.f32.gmra.mrb[2].mxu0 %vm313_vm1, %v296_v9  ;;  %1140 = vmatmul.mubr.msk.f32.gmra.mrb[2].mxu1 %vm313_vm1, %v296_v9 }
  0x88   : > { %v302_v14 = vpop.permute.xlu0 %301 }
  0xe9   : > { %v395_v15 = vpop.f32.mrb[0].mxu0  ;;  %v472_v16 = vpop.f32.mrb[0].mxu1 }
  0xea   : > { %v396_v17 = vadd.f32 %v395_v15, %v302_v14  ;;  %v473_v18 = vadd.f32 %v472_v16, %v302_v14  ;;  %v397_v19 = vpop.f32.mrb[1].mxu0  ;;  %v474_v20 = vpop.f32.mrb[1].mxu1 }
  0xeb   : > { %v398_v21 = vadd.f32 %v397_v19, %v302_v14  ;;  %v475_v22 = vadd.f32 %v474_v20, %v302_v14 }
  0xec   : > { %v484_v23 = vsel %vm483_vm2, %v396_v17, -inf  ;;  %v498_v24 = vsel %vm483_vm2, %v473_v18, -inf }
  0xed   : > { %v485_v25 = vrot.slane %v484_v23, 4  ;;  %v499_v26 = vrot.slane %v498_v24, 4  ;;  %v491_v27 = vsel %vm483_vm2, %v398_v21, -inf  ;;  %v505_v28 = vsel %vm483_vm2, %v475_v22, -inf  ;;  %v1359_v29 = vpop.f32.mrb[2].mxu0  ;;  %v1361_v30 = vpop.f32.mrb[2].mxu1 }
  0xee   : > { %v492_v31 = vrot.slane %v491_v27, 4  ;;  %v506_v32 = vrot.slane %v505_v28, 4  ;;  %v1363_v33 = vpop.f32.mrb[3].mxu0  ;;  %v1365_v34 = vpop.f32.mrb[3].mxu1 }
  0xef   : > { %v486_v35 = vmax.f32 %v484_v23, %v485_v25  ;;  %v500_v36 = vmax.f32 %v498_v24, %v499_v26 }
  0xf0   : > { %v493_v37 = vmax.f32 %v491_v27, %v492_v31  ;;  %v507_v38 = vmax.f32 %v505_v28, %v506_v32 }
  0xf1   : > { %v487_v39 = vrot.slane %v486_v35, 2  ;;  %v501_v40 = vrot.slane %v500_v36, 2 }
  0xf2   : > { %v494_v41 = vrot.slane %v493_v37, 2  ;;  %v508_v42 = vrot.slane %v507_v38, 2 }
  0xf3   : > { %v488_v43 = vmax.f32 %v486_v35, %v487_v39  ;;  %v502_v44 = vmax.f32 %v500_v36, %v501_v40 }
  0xf4   : > { %v495_v45 = vmax.f32 %v493_v37, %v494_v41  ;;  %v509_v46 = vmax.f32 %v507_v38, %v508_v42  ;;  %v1288_v37 = vmov 1966171168  }
  0xf5   : > { %v489_v47 = vrot.slane %v488_v43, 1  ;;  %v503_v48 = vrot.slane %v502_v44, 1  ;;  %v567_v38 = vunpack.c.l.s4 %v1288_v37 }
  0xf6   : > { %v496_v49 = vrot.slane %v495_v45, 1  ;;  %v510_v50 = vrot.slane %v509_v46, 1 }
  0xf7   : > { %v490_v51 = vmax.f32 %v488_v43, %v489_v47  ;;  %v504_v52 = vmax.f32 %v502_v44, %v503_v48  ;;  %v568_v39 = vunpack.c.0.s8 %v567_v38 }
  0xf8   : > { %v497_v53 = vmax.f32 %v495_v45, %v496_v49  ;;  %v511_v54 = vmax.f32 %v509_v46, %v510_v50 }
  0xf9   : > { %v512_v55 = vsub.f32 %v396_v17, %v490_v51  ;;  %v514_v56 = vsub.f32 %v473_v18, %v504_v52  ;;  %v571_v47 = vsub.s32 %v568_v39, %v1350_v11 }
  0xfa   : > { %v513_v57 = vsub.f32 %v398_v21, %v497_v53  ;;  %v515_v58 = vsub.f32 %v475_v22, %v511_v54 }
  0xfb   : > { %v516_v59 = vmul.f32 1.442695, %v512_v55  ;;  %v520_v60 = vmul.f32 1.442695, %v514_v56  ;;  %v599_v55 = vsub.s32 0, %v1350_v11  ;;  %v607_v56 = vsub.s32 2, %v1350_v11 }
  0xfc   : > { %v518_v61 = vmul.f32 1.442695, %v513_v57  ;;  %v522_v62 = vmul.f32 1.442695, %v515_v58  ;;  %v603_v57 = vsub.s32 1, %v1350_v11  ;;  %v307_v58 = vpop.permute.xlu0 %306 }
  0xfd   : > { %1174 = vpow2.f32 %v516_v59 }
  0xfe   : > { %1176 = vpow2.f32 %v520_v60 }
  0xff   : > { %1178 = vpow2.f32 %v518_v61  ;;  %v402_v61 = vadd.f32 %v1359_v29, %v307_v58 }
 0x100   : > { %1180 = vpow2.f32 %v522_v62  ;;  %v479_v62 = vadd.f32 %v1361_v30, %v307_v58 }
 0x107   : > { %v1175_v63 = vpop.eup %1174 }
 0x108   : > { %v1177_v0 = vpop.eup %1176  ;;  %v524_v1 = vsel %vm483_vm2, %v1175_v63, 0.0 }
 0x109   : > { %v1179_v2 = vpop.eup %1178  ;;  %v525_v3 = vrot.slane %v524_v1, 4  ;;  %v538_v4 = vsel %vm483_vm2, %v1177_v0, 0.0 }
 0x10a   : > { %v1181_v5 = vpop.eup %1180  ;;  %v539_v6 = vrot.slane %v538_v4, 4  ;;  %v531_v7 = vsel %vm483_vm2, %v1179_v2, 0.0 }
 0x10b   : > { %v526_v8 = vadd.f32 %v525_v3, %v524_v1  ;;  %v532_v9 = vrot.slane %v531_v7, 4  ;;  %v545_v10 = vsel %vm483_vm2, %v1181_v5, 0.0 }
 0x10c   : > { %v540_v12 = vadd.f32 %v539_v6, %v538_v4  ;;  %v546_v14 = vrot.slane %v545_v10, 4  ;;  %v404_v4 = vadd.f32 %v1363_v33, %v307_v58 }
 0x10d   : > { %v527_v15 = vrot.slane %v526_v8, 2  ;;  %v533_v16 = vadd.f32 %v532_v9, %v531_v7 }
 0x10e   : > { %v541_v17 = vrot.slane %v540_v12, 2  ;;  %v547_v18 = vadd.f32 %v546_v14, %v545_v10 }
 0x10f   : > { %v528_v19 = vadd.f32 %v527_v15, %v526_v8  ;;  %v534_v20 = vrot.slane %v533_v16, 2 }
 0x110   : > { %v542_v21 = vadd.f32 %v541_v17, %v540_v12  ;;  %v548_v22 = vrot.slane %v547_v18, 2 }
 0x111   : > { %v529_v23 = vrot.slane %v528_v19, 1  ;;  %v535_v24 = vadd.f32 %v534_v20, %v533_v16 }
 0x112   : > { %v543_v25 = vrot.slane %v542_v21, 1  ;;  %v549_v26 = vadd.f32 %v548_v22, %v547_v18  ;;  %v481_v22 = vadd.f32 %v1365_v34, %v307_v58 }
 0x113   : > { %v530_v27 = vadd.f32 %v529_v23, %v528_v19  ;;  %v536_v28 = vrot.slane %v535_v24, 1  ;;  %v611_v19 = vsub.s32 3, %v1350_v11 }
 0x114   : > { %v544_v31 = vadd.f32 %v543_v25, %v542_v21  ;;  %v550_v32 = vrot.slane %v549_v26, 1 }
 0x115   : > { %1182 = vrcp.f32 %v530_v27  ;;  %v537_v35 = vadd.f32 %v536_v28, %v535_v24 }
 0x116   : > { %1184 = vrcp.f32 %v544_v31  ;;  %v551_v36 = vadd.f32 %v550_v32, %v549_v26 }
 0x117   : > { %1186 = vrcp.f32 %v537_v35 }
 0x118   : > { %1188 = vrcp.f32 %v551_v36 }
 0x11f   : > { %v1183_v40 = vpop.eup %1182 }
 0x120   : > { %v1185_v41 = vpop.eup %1184  ;;  %v556_v42 = vmul.f32 %v1183_v40, %v1175_v63 }
 0x121   : > { %v1187_v43 = vpop.eup %1186  ;;  %v558_v44 = vmul.f32 %v1185_v41, %v1177_v0 }
 0x122   : > { %v1189_v45 = vpop.eup %1188  ;;  %v557_v46 = vmul.f32 %v1187_v43, %v1179_v2 }
 0x123   : > { %v559_v48 = vmul.f32 %v1189_v45, %v1181_v5 }
 0x124   : > { %v564_v49 = vcombine.low %v556_v42, %v557_v46 }
 0x125   : > { %v565_v50 = vcombine.low %v558_v44, %v559_v48 }
 0x126   : > { %v572_v51 = vrot.slane %v564_v49, %v571_v47 }
 0x127   : > { %v579_v52 = vrot.slane %v565_v50, %v571_v47 }
 0x129   : > { %v580_v53 = vcombine.low %v572_v51, %v579_v52  ;;  %v581_v54 = vcombine.high %v572_v51, %v579_v52 }
 0x12b   : > { %v588_v59 = vrot.slane %v580_v53, %v571_v47  ;;  %v595_v60 = vrot.slane %v581_v54, %v571_v47 }
 0x12d   : > { %v596_v63 = vcombine.high %v588_v59, %v588_v59  ;;  %v600_v0 = vrot.slane %v588_v59, %v599_v55  ;;  %v616_v1 = vrot.slane %v595_v60, %v599_v55  ;;  %v608_v2 = vrot.slane %v588_v59, %v607_v56 }
 0x12e   : > { %v624_v3 = vrot.slane %v595_v60, %v607_v56  ;;  %v604_v5 = vrot.slane %v588_v59, %v603_v57  ;;  %v620_v6 = vrot.slane %v595_v60, %v603_v57  ;;  %v612_v33 = vrot.slane %v588_v59, %v611_v19 }
 0x12f   : > { %v632_v7 = vrot.slane %v596_v63, %v599_v55  ;;  %v657_v8 = vmul.f32 %v600_v0, %v402_v61  ;;  %v661_v9 = vmul.f32 %v616_v1, %v402_v61  ;;  %v640_v10 = vrot.slane %v596_v63, %v607_v56 }
 0x130   : > { %v659_v12 = vmul.f32 %v608_v2, %v479_v62  ;;  %v663_v14 = vmul.f32 %v624_v3, %v479_v62  ;;  %v636_v15 = vrot.slane %v596_v63, %v603_v57  ;;  %v1378_v16 = vmul.f32 %v604_v5, %v404_v4 }
 0x131   : > { %v665_v29 = vmul.f32 %v632_v7, %v402_v61  ;;  %v667_v30 = vmul.f32 %v640_v10, %v479_v62  ;;  %v662_v17 = vmul.f32 %v620_v6, %v404_v4  ;;  %v628_v23 = vrot.slane %v595_v60, %v611_v19 }
 0x132   : > { %v1380_v18 = vmul.f32 %v636_v15, %v404_v4  ;;  %v691_v20 = vadd.f32 -1e+30, %v659_v12  ;;  %v644_v24 = vrot.slane %v596_v63, %v611_v19  ;;  %v695_v25 = vadd.f32 -1e+30, %v663_v14 }
 0x133   : > { %v699_v21 = vadd.f32 -1e+30, %v667_v30  ;;  %v660_v27 = vmul.f32 %v612_v33, %v481_v22  ;;  %v664_v31 = vmul.f32 %v628_v23, %v481_v22  ;;  %v1388_v35 = vmax.f32 %v657_v8, -1e+30 }
 0x134   : > { %v1384_v26 = vmax.f32 %v691_v20, -1e+30  ;;  %v668_v32 = vmul.f32 %v644_v24, %v481_v22  ;;  %v1390_v37 = vmax.f32 %v665_v29, -1e+30  ;;  %v1392_v39 = vmax.f32 %v695_v25, -1e+30 }
 0x135   : > { %v1386_v28 = vmax.f32 %v699_v21, -1e+30  ;;  %v692_v36 = vadd.f32 -1e+30, %v660_v27  ;;  %v696_v11 = vadd.f32 -1e+30, %v664_v31  ;;  %v785_v55 = vsub.f32 %v657_v8, %v1388_v35 }
 0x136   : > { %v700_v38 = vadd.f32 -1e+30, %v668_v32  ;;  %v1395_v34 = vmax.f32 %v1378_v16, -1e+30  ;;  %v872_v41 = vmax.f32 %v1388_v35, %v1384_v26  ;;  %v1402_v42 = vmax.f32 %v1380_v18, -1e+30 }
 0x137   : > { %v1397_v40 = vmax.f32 %v692_v36, -1e+30  ;;  %v1404_v43 = vmax.f32 %v696_v11, -1e+30  ;;  %v882_v45 = vmax.f32 %v1390_v37, %v1386_v28  ;;  %v1410_v46 = vmax.f32 %v661_v9, -1e+30 }
 0x138   : > { %v1406_v44 = vmax.f32 %v700_v38, -1e+30  ;;  %v1412_v47 = vmax.f32 %v662_v17, -1e+30  ;;  %v793_v57 = vsub.f32 %v665_v29, %v1390_v37  ;;  %v787_v58 = vsub.f32 %v691_v20, %v1384_v26 }
 0x139   : > { %v873_v48 = vmax.f32 %v1395_v34, %v1397_v40  ;;  %v877_v51 = vmax.f32 %v1410_v46, %v1392_v39  ;;  %v789_v56 = vsub.f32 %v661_v9, %v1410_v46  ;;  %v797_v59 = vmul.f32 1.442695, %v785_v55 }
 0x13a   : > { %v883_v49 = vmax.f32 %v1402_v42, %v1406_v44  ;;  %v878_v52 = vmax.f32 %v1412_v47, %v1404_v43  ;;  %v791_v60 = vsub.f32 %v695_v25, %v1392_v39  ;;  %v795_v62 = vsub.f32 %v699_v21, %v1386_v28 }
 0x13b   : > { %v874_v50 = vmax.f32 %v872_v41, %v873_v48  ;;  %v805_v61 = vmul.f32 1.442695, %v789_v56  ;;  %v813_v63 = vmul.f32 1.442695, %v793_v57  ;;  %v786_v0 = vsub.f32 %v1378_v16, %v1395_v34 }
 0x13c   : > { %v884_v53 = vmax.f32 %v882_v45, %v883_v49  ;;  %v879_v54 = vmax.f32 %v877_v51, %v878_v52  ;;  %v801_v1 = vmul.f32 1.442695, %v787_v58  ;;  %v790_v2 = vsub.f32 %v662_v17, %v1412_v47 }
 0x13d   : > { %875 = vmax.xlane.f32.xlu1 %v874_v50  ;;  %1190 = vpow2.f32 %v797_v59  ;;  %v809_v3 = vmul.f32 1.442695, %v791_v60  ;;  %v794_v4 = vsub.f32 %v1380_v18, %v1402_v42  ;;  %v737_v5 = vsub.f32 -1e+30, %v1388_v35 }
 0x13e   : > { %885 = vmax.xlane.f32.xlu0 %v884_v53  ;;  %1192 = vpow2.f32 %v805_v61  ;;  %v817_v6 = vmul.f32 1.442695, %v795_v62  ;;  %v738_v7 = vsub.f32 -1e+30, %v1395_v34  ;;  %v799_v8 = vmul.f32 1.442695, %v786_v0 }
 0x13f   : > { %1194 = vpow2.f32 %v813_v63  ;;  %v807_v9 = vmul.f32 1.442695, %v790_v2  ;;  %v788_v10 = vsub.f32 %v692_v36, %v1397_v40  ;;  %v815_v12 = vmul.f32 1.442695, %v794_v4 }
 0x140   : > { %1196 = vpow2.f32 %v801_v1  ;;  %v792_v14 = vsub.f32 %v696_v11, %v1404_v43  ;;  %v796_v15 = vsub.f32 %v700_v38, %v1406_v44  ;;  %v749_v16 = vmul.f32 1.442695, %v737_v5 }
 0x141   : > { %880 = vmax.xlane.f32.xlu1 %v879_v54  ;;  %1198 = vpow2.f32 %v809_v3  ;;  %v739_v29 = vsub.f32 -1e+30, %v1384_v26  ;;  %v751_v30 = vmul.f32 1.442695, %v738_v7  ;;  %v803_v17 = vmul.f32 1.442695, %v788_v10 }
 0x142   : > { %1200 = vpow2.f32 %v817_v6  ;;  %v740_v18 = vsub.f32 -1e+30, %v1397_v40  ;;  %v741_v19 = vsub.f32 -1e+30, %v1410_v46  ;;  %v811_v20 = vmul.f32 1.442695, %v792_v14 }
 0x143   : > { %1202 = vpow2.f32 %v799_v8  ;;  %v742_v33 = vsub.f32 -1e+30, %v1412_v47  ;;  %v819_v21 = vmul.f32 1.442695, %v796_v15  ;;  %v753_v23 = vmul.f32 1.442695, %v739_v29 }
 0x144   : > { %1204 = vpow2.f32 %v807_v9  ;;  %v743_v24 = vsub.f32 -1e+30, %v1392_v39  ;;  %v755_v27 = vmul.f32 1.442695, %v740_v18  ;;  %v744_v31 = vsub.f32 -1e+30, %v1404_v43 }
 0x145   : > { %1206 = vpow2.f32 %v815_v12  ;;  %v745_v36 = vsub.f32 -1e+30, %v1390_v37  ;;  %v757_v11 = vmul.f32 1.442695, %v741_v19  ;;  %v746_v41 = vsub.f32 -1e+30, %v1402_v42 }
 0x146   : > { %1208 = vpow2.f32 %v749_v16  ;;  %v759_v45 = vmul.f32 1.442695, %v742_v33  ;;  %v761_v49 = vmul.f32 1.442695, %v743_v24  ;;  %v747_v50 = vsub.f32 -1e+30, %v1386_v28 }
 0x147   : > { %v1442_v22 = vpop.eup %1190  ;;  %1210 = vpow2.f32 %v751_v30  ;;  %v763_v52 = vmul.f32 1.442695, %v744_v31  ;;  %v748_v54 = vsub.f32 -1e+30, %v1406_v44  ;;  %v765_v55 = vmul.f32 1.442695, %v745_v36 }
 0x148   : > { %v1445_v25 = vpop.eup %1192  ;;  %1212 = vpow2.f32 %v803_v17  ;;  %v767_v57 = vmul.f32 1.442695, %v746_v41  ;;  %v769_v59 = vmul.f32 1.442695, %v747_v50 }
 0x149   : > { %v1448_v32 = vpop.eup %1194  ;;  %1214 = vpow2.f32 %v811_v20  ;;  %v771_v62 = vmul.f32 1.442695, %v748_v54 }
 0x14a   : > { %v1451_v38 = vpop.eup %1196  ;;  %1216 = vpow2.f32 %v819_v21 }
 0x14b   : > { %v1454_v48 = vpop.eup %1198  ;;  %1218 = vpow2.f32 %v753_v23 }
 0x14c   : > { %v1457_v51 = vpop.eup %1200  ;;  %1220 = vpow2.f32 %v755_v27 }
 0x14d   : > { %v1459_v53 = vpop.eup %1202  ;;  %1222 = vpow2.f32 %v757_v11 }
 0x14e   : > { %v1462_v56 = vpop.eup %1204  ;;  %1224 = vpow2.f32 %v759_v45 }
 0x14f   : > { %v1464_v58 = vpop.eup %1206  ;;  %1226 = vpow2.f32 %v761_v49 }
 0x150   : > { %v1209_v60 = vpop.eup %1208  ;;  %1228 = vpow2.f32 %v763_v52 }
 0x151   : > { %v1211_v61 = vpop.eup %1210  ;;  %1230 = vpow2.f32 %v765_v55  ;;  %v773_v41 = vmul.f32 0.0, %v1209_v60 }
 0x152   : > { %v1466_v63 = vpop.eup %1212  ;;  %1232 = vpow2.f32 %v767_v57  ;;  %v774_v50 = vmul.f32 0.0, %v1211_v61 }
 0x153   : > { %v1468_v0 = vpop.eup %1214  ;;  %1234 = vpow2.f32 %v769_v59  ;;  %v821_v57 = vadd.f32 %v1442_v22, %v773_v41 }
 0x154   : > { %v1470_v2 = vpop.eup %1216  ;;  %1236 = vpow2.f32 %v771_v62  ;;  %v822_v60 = vadd.f32 %v1459_v53, %v774_v50 }
 0x155   : > { %v1219_v8 = vpop.eup %1218 }
 0x156   : > { %v1221_v12 = vpop.eup %1220 }
 0x157   : > { %v1479_v29 = vpop.eup %1222  ;;  %v776_v55 = vmul.f32 0.0, %v1221_v12 }
 0x158   : > { %v1225_v30 = vpop.eup %1224 }
 0x159   : > { %v1227_v17 = vpop.eup %1226  ;;  %v778_v22 = vmul.f32 0.0, %v1225_v30 }
 0x15a   : > { %v1229_v20 = vpop.eup %1228 }
 0x15b   : > { %v1231_v23 = vpop.eup %1230 }
 0x15c   : > { %v781_v59 = vmul.f32 0.0, %v1231_v23 }
 0x15e   : > { %v829_v12 = vadd.f32 %v1448_v32, %v781_v59  ;;  %v826_v32 = vadd.f32 %v1462_v56, %v778_v22 }
 0x1ca   : > { %v876_v1 = vpop.xlane.xlu1 %875 }
 0x1cb   : > { %v899_v3 = vsub.f32 %v1388_v35, %v876_v1  ;;  %v900_v4 = vsub.f32 %v1395_v34, %v876_v1  ;;  %v901_v5 = vsub.f32 %v1384_v26, %v876_v1  ;;  %v902_v6 = vsub.f32 %v1397_v40, %v876_v1  ;;  %v886_v7 = vpop.xlane.xlu0 %885 }
 0x1cc   : > { %v907_v9 = vsub.f32 %v1390_v37, %v886_v7  ;;  %v908_v10 = vsub.f32 %v1402_v42, %v886_v7  ;;  %v909_v35 = vsub.f32 %v1386_v28, %v886_v7  ;;  %v910_v26 = vsub.f32 %v1406_v44, %v886_v7 }
 0x1cd   : > { %v911_v14 = vmul.f32 1.442695, %v899_v3  ;;  %v913_v15 = vmul.f32 1.442695, %v900_v4  ;;  %v915_v16 = vmul.f32 1.442695, %v901_v5  ;;  %v968_v28 = vrot.slane %v876_v1, %v1353_v13 }
 0x1ce   : > { %v917_v34 = vmul.f32 1.442695, %v902_v6  ;;  %v881_v40 = vpop.xlane.xlu1 %880  ;;  %v927_v37 = vmul.f32 1.442695, %v907_v9  ;;  %v929_v18 = vmul.f32 1.442695, %v908_v10  ;;  %v976_v24 = vrot.slane %v886_v7, %v1353_v13 }
 0x1cf   : > { %1238 = vpow2.f32 %v911_v14  ;;  %v903_v42 = vsub.f32 %v1410_v46, %v881_v40  ;;  %v904_v19 = vsub.f32 %v1412_v47, %v881_v40  ;;  %v931_v44 = vmul.f32 1.442695, %v909_v35  ;;  %v1233_v47 = vpop.eup %1232 }
 0x1d0   : > { %1240 = vpow2.f32 %v913_v15  ;;  %v905_v33 = vsub.f32 %v1392_v39, %v881_v40  ;;  %v972_v21 = vrot.slane %v881_v40, %v1353_v13  ;;  %v933_v46 = vmul.f32 1.442695, %v910_v26  ;;  %v1235_v39 = vpop.eup %1234 }
 0x1d1   : > { %1242 = vpow2.f32 %v915_v16  ;;  %v906_v27 = vsub.f32 %v1404_v43, %v881_v40  ;;  %v919_v31 = vmul.f32 1.442695, %v903_v42  ;;  %v921_v11 = vmul.f32 1.442695, %v904_v19  ;;  %v1237_v52 = vpop.eup %1236 }
 0x1d2   : > { %1244 = vpow2.f32 %v917_v34  ;;  %v978_v36 = vsel %vm977_vm3, %v972_v21, %v968_v28  ;;  %v923_v49 = vmul.f32 1.442695, %v905_v33  ;;  %v775_v43 = vmul.f32 0.0, %v1219_v8 }
 0x1d3   : > { %1246 = vpow2.f32 %v927_v37  ;;  %v980_v45 = vsel %vm979_vm4, %v976_v24, %v978_v36  ;;  %v925_v54 = vmul.f32 1.442695, %v906_v27  ;;  %v782_v1 = vmul.f32 0.0, %v1233_v47 }
 0x1d4   : > { %1248 = vpow2.f32 %v929_v18  ;;  %983 = vst.msk [vmem:[%s257_s8] sm:$0x7] %vm982_vm5, %v980_v45  ;;  %v823_v5 = vadd.f32 %v1451_v38, %v775_v43  ;;  %v783_v7 = vmul.f32 0.0, %v1235_v39  ;;  %v824_v8 = vadd.f32 %v1466_v63, %v776_v55 }
 0x1d5   : > { %1250 = vpow2.f32 %v931_v44  ;;  %v777_v10 = vmul.f32 0.0, %v1479_v29  ;;  %v784_v16 = vmul.f32 0.0, %v1237_v52  ;;  %v830_v35 = vadd.f32 %v1464_v58, %v782_v1 }
 0x1d6   : > { %1252 = vpow2.f32 %v933_v46  ;;  %v779_v26 = vmul.f32 0.0, %v1227_v17  ;;  %v831_v28 = vadd.f32 %v1457_v51, %v783_v7  ;;  %v780_v29 = vmul.f32 0.0, %v1229_v20 }
 0x1d7   : > { %1254 = vpow2.f32 %v919_v31  ;;  %v825_v30 = vadd.f32 %v1445_v25, %v777_v10  ;;  %v832_v33 = vadd.f32 %v1470_v2, %v784_v16 }
 0x1d8   : > { %1256 = vpow2.f32 %v921_v11  ;;  %v827_v24 = vadd.f32 %v1454_v48, %v779_v26  ;;  %v828_v25 = vadd.f32 %v1468_v0, %v780_v29 }
 0x1d9   : > { %v1239_v62 = vpop.eup %1238  ;;  %1258 = vpow2.f32 %v923_v49 }
 0x1da   : > { %v1241_v3 = vpop.eup %1240  ;;  %1260 = vpow2.f32 %v925_v54  ;;  %v935_v61 = vmul.f32 %v1239_v62, %v821_v57 }
 0x1db   : > { %v1243_v4 = vpop.eup %1242  ;;  %v936_v6 = vmul.f32 %v1241_v3, %v822_v60 }
 0x1dc   : > { %v1245_v9 = vpop.eup %1244  ;;  %v937_v15 = vmul.f32 %v1243_v4, %v823_v5 }
 0x1dd   : > { %v1247_v14 = vpop.eup %1246  ;;  %v947_v53 = vadd.f32 %v936_v6, %v935_v61  ;;  %v938_v37 = vmul.f32 %v1245_v9, %v824_v8 }
 0x1de   : > { %v1249_v34 = vpop.eup %1248  ;;  %v943_v40 = vmul.f32 %v1247_v14, %v829_v12 }
 0x1df   : > { %v1251_v38 = vpop.eup %1250  ;;  %v948_v42 = vadd.f32 %v947_v53, %v937_v15  ;;  %v944_v63 = vmul.f32 %v1249_v34, %v830_v35 }
 0x1e0   : > { %v1253_v18 = vpop.eup %1252  ;;  %v945_v58 = vmul.f32 %v1251_v38, %v831_v28 }
 0x1e1   : > { %v1255_v19 = vpop.eup %1254  ;;  %v949_v44 = vadd.f32 %v948_v42, %v938_v37  ;;  %v957_v21 = vadd.f32 %v944_v63, %v943_v40  ;;  %v946_v27 = vmul.f32 %v1253_v18, %v832_v33 }
 0x1e2   : > { %v1257_v17 = vpop.eup %1256  ;;  %v939_v23 = vmul.f32 %v1255_v19, %v825_v30 }
 0x1e3   : > { %v1259_v46 = vpop.eup %1258  ;;  %950 = vadd.xlane.f32.xlu1 %v949_v44  ;;  %v940_v51 = vmul.f32 %v1257_v17, %v826_v32  ;;  %v958_v47 = vadd.f32 %v957_v21, %v945_v58 }
 0x1e4   : > { %v1261_v20 = vpop.eup %1260  ;;  %v941_v56 = vmul.f32 %v1259_v46, %v827_v24 }
 0x1e5   : > { %v952_v31 = vadd.f32 %v940_v51, %v939_v23  ;;  %v959_v36 = vadd.f32 %v958_v47, %v946_v27  ;;  %v942_v39 = vmul.f32 %v1261_v20, %v828_v25 }
 0x1e7   : > { %v953_v2 = vadd.f32 %v952_v31, %v941_v56 }
 0x1e9   : > { %v954_v11 = vadd.f32 %v953_v2, %v942_v39 }
 0x1eb   : > { %955 = vadd.xlane.f32.xlu1 %v954_v11 }
 0x1ef   : > { %960 = vadd.xlane.f32.xlu1 %v959_v36 }
 0x270   : > { %v951_v41 = vpop.xlane.xlu1 %950 }
 0x271   : > { %v990_v48 = vrot.slane %v951_v41, %v1353_v13 }
 0x278   : > { %v956_v45 = vpop.xlane.xlu1 %955 }
 0x279   : > { %v994_v49 = vrot.slane %v956_v45, %v1353_v13 }
 0x27b   : > { %v999_v52 = vsel %vm977_vm3, %v994_v49, %v990_v48 }
 0x27c   : > { %v961_v50 = vpop.xlane.xlu1 %960 }
 0x27d   : > { %v998_v0 = vrot.slane %v961_v50, %v1353_v13 }
 0x27f   : > { %v1000_v54 = vsel %vm979_vm4, %v998_v0, %v999_v52 }
 0x280   : > { %1002 = vst.msk [vmem:[%s264_s11] sm:$0x7] %vm982_vm5, %v1000_v54 }
 0x281 PF: > { %s15_s17 = sadd.s32 1, %s1284_s17   ;;  %s1536_s15 = smov %s1280_s16 }
 0x282   : > { %p12_p5 = scmp.ge.s32.totalorder %s15_s17, 4   ;;  %s1537_s16 = smov %s1539_s18 }
 0x284   :  { %14 = sbr.rel (!%p12_p5) target bundleno = 2 (0x2), region = 82 }

</bundles_post_ra>
